<compile_context>
chip_gen: v7x
topology: tpu7x:2x2x1
jax: 0.10.0
libtpu: 0.0.40
codegen_flags: <defaults>
</compile_context>

<pallas_src>
import functools
import math

import jax
import jax.numpy as jnp
from jax import lax
from jax.experimental import pallas as pl
from jax.experimental.pallas import tpu as pltpu

EPS = 1e-4


def _round_up(x, m):
    return ((x + m - 1) // m) * m


def _fit_tile(dim, max_tile, align):
    """Largest tile <= max_tile (an align-multiple) such that total padding stays below one
    align unit per block (avoids e.g. padding batch=257 all the way to 512)."""
    max_tile = max(align, (max_tile // align) * align)
    dim_a = _round_up(dim, align)
    if dim_a <= max_tile:
        return dim_a, dim_a
    nblocks = -(-dim_a // max_tile)
    tile = _round_up(-(-dim_a // nblocks), align)
    return tile, tile * nblocks


def _mp_linear_kernel(*refs, eps_sqrt_k, has_bias, acc_in_out):
    it = iter(refs)
    x_ref = next(it)
    w_ref = next(it)
    b_ref = next(it) if has_bias else None
    o_ref = next(it)
    acc_ref = o_ref if acc_in_out else next(it)   # f32 output block doubles as accumulator
    ssq_ref = next(it)                            # (tn, 1) f32 running row sum-of-squares

    k = pl.program_id(2)

    @pl.when(k == 0)
    def _init():
        acc_ref[...] = jnp.zeros_like(acc_ref)
        ssq_ref[...] = jnp.zeros_like(ssq_ref)

    w = w_ref[...]
    # Partial matmul: contract the in_features (last) dim of both tiles -> (tm, tn).
    # Native-dtype MXU feed, f32 accumulation.
    acc_ref[...] += lax.dot_general(
        x_ref[...], w,
        dimension_numbers=(((1,), (1,)), ((), ())),
        preferred_element_type=jnp.float32,
    )
    # Fused partial row norm: sum of squares of this K-slice of the weight tile (VPU/XLU,
    # hidden under the MXU / DMA).
    wf = w.astype(jnp.float32)
    ssq_ref[...] += jnp.sum(wf * wf, axis=1, keepdims=True)      # (tn, 1)

    @pl.when(k == pl.num_programs(2) - 1)
    def _finalize():
        # scale_o = 1 / (eps*sqrt(K) + ||w_row_o||); single (tn,1)->(1,tn) relayout per tile.
        scale = 1.0 / (eps_sqrt_k + jnp.sqrt(ssq_ref[...]))       # (tn, 1)
        scale_row = scale.reshape(1, scale.shape[0])              # (1, tn)
        y = acc_ref[...] * scale_row
        if has_bias:
            y = y + b_ref[...]
        o_ref[...] = y.astype(o_ref.dtype)


def magnitude_preserving_linear(x, weight, bias=None, *, tm=512, tn=1024, tk=512):
    """x: (..., in_features), weight: (out, in), bias: (out,) or None -> (..., out)."""
    *lead, in_features = x.shape
    out_features, in_features_w = weight.shape
    assert in_features == in_features_w

    x2 = x.reshape(-1, in_features)
    batch = x2.shape[0]
    out_dtype = x.dtype

    x_bytes = jnp.dtype(x.dtype).itemsize
    w_bytes = jnp.dtype(weight.dtype).itemsize
    o_bytes = jnp.dtype(out_dtype).itemsize
    sub_align = 8 * max(1, 4 // max(1, x_bytes))     # 8 for f32, 16 for bf16, 32 for int8

    tm, Mp = _fit_tile(batch, tm, sub_align)
    tn, Np = _fit_tile(out_features, tn, 128)
    tk, Kp = _fit_tile(in_features, tk, 128)

    # v7x megacore: make sure at least one "parallel" axis has >= 2 blocks when possible.
    if Mp // tm == 1 and Np // tn == 1:
        if Np >= 256:
            tn, Np = _fit_tile(out_features, _round_up(-(-Np // 2), 128), 128)
        elif Mp >= 2 * sub_align:
            tm, Mp = _fit_tile(batch, _round_up(-(-Mp // 2), sub_align), sub_align)

    has_bias = bias is not None
    acc_in_out = out_dtype == jnp.float32            # accumulate straight into f32 output block

    # Pad only when strictly required (ragged tails); padding is < one align unit per block.
    if Mp != batch or Kp != in_features:
        x2 = jnp.pad(x2, ((0, Mp - batch), (0, Kp - in_features)))
    w_p = weight
    if Np != out_features or Kp != in_features:
        w_p = jnp.pad(weight, ((0, Np - out_features), (0, Kp - in_features)))

    inputs = [x2, w_p]
    in_specs = [pl.BlockSpec((tm, tk), lambda i, j, k: (i, k))]

    # Deeper weight pipelining when the kernel is weight-streaming bound (tiny batch).
    deep_weight = tm <= 64 and (Kp // tk) >= 2
    w_idx = lambda i, j, k: (j, k)
    w_spec = pl.BlockSpec((tn, tk), w_idx)
    if deep_weight:
        try:
            w_spec = pl.BlockSpec((tn, tk), w_idx, pipeline_mode=pl.Buffered(3))
        except (TypeError, AttributeError):
            w_spec = pl.BlockSpec((tn, tk), w_idx)
    in_specs.append(w_spec)

    if has_bias:
        bias2d = bias.reshape(1, out_features).astype(jnp.float32)
        if Np != out_features:
            bias2d = jnp.pad(bias2d, ((0, 0), (0, Np - out_features)))
        inputs.append(bias2d)
        in_specs.append(pl.BlockSpec((1, tn), lambda i, j, k: (0, j)))

    scratch_shapes = []
    if not acc_in_out:
        scratch_shapes.append(pltpu.VMEM((tm, tn), jnp.float32))
    scratch_shapes.append(pltpu.VMEM((tn, 1), jnp.float32))

    grid = (Mp // tm, Np // tn, Kp // tk)

    n_wbuf = 3 if deep_weight else 2
    est_vmem = (2 * tm * tk * x_bytes + n_wbuf * tn * tk * w_bytes
                + 2 * tm * tn * o_bytes
                + (0 if acc_in_out else tm * tn * 4)
                + tn * 128 * 4
                + (4 * tn * 4 if has_bias else 0))
    # Stay well under v7x's 64 MiB physical VMEM while giving v5e/v6e enough room.
    vmem_limit = int(min(64 * 1024 * 1024, max(32 * 1024 * 1024, 2 * est_vmem)))

    cost = pl.CostEstimate(
        flops=2 * batch * in_features * out_features + 2 * in_features * out_features,
        transcendentals=out_features,
        bytes_accessed=int(x2.size * x_bytes + w_p.size * w_bytes + Mp * Np * o_bytes),
    )

    kernel = functools.partial(
        _mp_linear_kernel,
        eps_sqrt_k=EPS * math.sqrt(in_features),
        has_bias=has_bias,
        acc_in_out=acc_in_out,
    )

    y_p = pl.pallas_call(
        kernel,
        out_shape=jax.ShapeDtypeStruct((Mp, Np), out_dtype),
        grid_spec=pltpu.PrefetchScalarGridSpec(
            num_scalar_prefetch=0,
            grid=grid,
            in_specs=in_specs,
            out_specs=pl.BlockSpec((tm, tn), lambda i, j, k: (i, j)),
            scratch_shapes=scratch_shapes,
        ),
        compiler_params=pltpu.CompilerParams(
            dimension_semantics=("parallel", "parallel", "arbitrary"),
            vmem_limit_bytes=vmem_limit,
        ),
        cost_estimate=cost,
    )(*inputs)

    y = y_p[:batch, :out_features]
    return y.reshape(*lead, out_features)


def _reference(x, weight, bias):
    # Pure-JAX reference mirroring the PyTorch forward (eval mode).
    in_features = weight.shape[1]
    w32 = weight.astype(jnp.float32)
    n = jnp.linalg.norm(w32, axis=1, keepdims=True)
    alpha = math.sqrt(n.size / w32.size)                     # = 1/sqrt(in_features)
    w_eff = w32 / (EPS + alpha * n) / math.sqrt(in_features)
    y = x.astype(jnp.float32) @ w_eff.T
    if bias is not None:
        y = y + bias.astype(jnp.float32)
    return y.astype(x.dtype)


if __name__ == "__main__":
    key = jax.random.PRNGKey(0)

    # Case 1: small module-sized shapes (single-step grid, fused norm + bias).
    k1, k2, key = jax.random.split(key, 3)
    x1 = jax.random.normal(k1, (8, 32), jnp.float32)
    w1 = jax.random.normal(k2, (64, 32), jnp.float32)
    b1 = jnp.zeros((64,), jnp.float32)
    y1 = jax.block_until_ready(magnitude_preserving_linear(x1, w1, b1))
    r1 = _reference(x1, w1, b1)
    assert y1.shape == (8, 64)
    assert jnp.allclose(y1, r1, atol=1e-4, rtol=1e-4), "mismatch vs reference (case 1)"

    # Case 2: multi-tile N/K grid -> exercises K-accumulator and fused-norm accumulation.
    k1, k2, k3, key = jax.random.split(key, 4)
    x2 = jax.random.normal(k1, (16, 256), jnp.float32)
    w2 = jax.random.normal(k2, (192, 256), jnp.float32)
    b2 = jax.random.normal(k3, (192,), jnp.float32)
    y2 = jax.block_until_ready(
        magnitude_preserving_linear(x2, w2, b2, tm=16, tn=128, tk=128))
    r2 = _reference(x2, w2, b2)
    assert y2.shape == (16, 192)
    assert jnp.allclose(y2, r2, atol=1e-4, rtol=1e-4), "mismatch vs reference (case 2)"

    # Case 3: bias=None kernel variant, bf16 MXU feed with f32 scratch accumulator,
    #         bf16 sublane packing (16) and the parallel-M split.
    k1, k2, key = jax.random.split(key, 3)
    x3 = jax.random.normal(k1, (24, 160), jnp.float32).astype(jnp.bfloat16)
    w3 = jax.random.normal(k2, (96, 160), jnp.float32).astype(jnp.bfloat16)
    y3 = jax.block_until_ready(magnitude_preserving_linear(x3, w3, None))
    r3 = _reference(x3, w3, None)
    assert y3.shape == (24, 96)
    assert jnp.allclose(y3.astype(jnp.float32), r3.astype(jnp.float32),
                        atol=3e-2, rtol=3e-2), "mismatch vs reference (case 3)"

    print("KERNEL_OK")
</pallas_src>

<mosaic_0001>
module attributes {stable_mosaic.version = 11 : i64} {
  func.func @_mp_linear_kernel(%arg0: i32, %arg1: i32, %arg2: i32, %arg3: memref<8x128xf32, #tpu.memory_space<vmem>>, %arg4: memref<128x128xf32, #tpu.memory_space<vmem>>, %arg5: memref<1x128xf32, #tpu.memory_space<vmem>>, %arg6: memref<8x128xf32, #tpu.memory_space<vmem>>, %arg7: memref<128x1xf32, #tpu.memory_space<vmem>>) attributes {dimension_semantics = [#tpu.dimension_semantics<parallel>, #tpu.dimension_semantics<parallel>, #tpu.dimension_semantics<arbitrary>], iteration_bounds = array<i64: 1, 1, 1>, scalar_prefetch = 0 : i64, scratch_operands = 1 : i64, tpu.core_type = #tpu.core_type<tc>, window_params = [{transform_indices = @transform_0, window_bounds = array<i64: 8, 128>}, {transform_indices = @transform_1, window_bounds = array<i64: 128, 128>}, {transform_indices = @transform_2, window_bounds = array<i64: 1, 128>}, {transform_indices = @transform_3, window_bounds = array<i64: 8, 128>}]} {
    %c0_i32 = arith.constant 0 : i32
    %0 = arith.cmpi eq, %arg2, %c0_i32 : i32
    %1 = arith.extui %0 : i1 to i32
    %c0_i32_0 = arith.constant 0 : i32
    %2 = arith.cmpi ne, %1, %c0_i32_0 : i32
    scf.if %2 {
      %cst_15 = arith.constant 0.000000e+00 : f32
      %18 = vector.broadcast %cst_15 : f32 to vector<8x128xf32>
      %c0_16 = arith.constant 0 : index
      %c0_17 = arith.constant 0 : index
      %19 = vector.load %arg6[%c0_16, %c0_17] : memref<8x128xf32, #tpu.memory_space<vmem>>, vector<8x128xf32>
      tpu.vector_store %arg6[%c0_16, %c0_17], %18 {strides = array<i32>} : memref<8x128xf32, #tpu.memory_space<vmem>>, vector<8x128xf32>,
      %cst_18 = arith.constant 0.000000e+00 : f32
      %20 = vector.broadcast %cst_18 : f32 to vector<128x1xf32>
      %c0_19 = arith.constant 0 : index
      %c0_20 = arith.constant 0 : index
      %21 = vector.load %arg7[%c0_19, %c0_20] : memref<128x1xf32, #tpu.memory_space<vmem>>, vector<128x1xf32>
      tpu.vector_store %arg7[%c0_19, %c0_20], %20 {strides = array<i32>} : memref<128x1xf32, #tpu.memory_space<vmem>>, vector<128x1xf32>,
    } else {
    }
    %c0 = arith.constant 0 : index
    %c0_1 = arith.constant 0 : index
    %3 = vector.load %arg4[%c0, %c0_1] : memref<128x128xf32, #tpu.memory_space<vmem>>, vector<128x128xf32>
    %c0_2 = arith.constant 0 : index
    %c0_3 = arith.constant 0 : index
    %4 = vector.load %arg6[%c0_2, %c0_3] : memref<8x128xf32, #tpu.memory_space<vmem>>, vector<8x128xf32>
    %c0_4 = arith.constant 0 : index
    %c0_5 = arith.constant 0 : index
    %5 = vector.load %arg3[%c0_4, %c0_5] : memref<8x128xf32, #tpu.memory_space<vmem>>, vector<8x128xf32>
    %cst = arith.constant dense<0.000000e+00> : vector<8x128xf32>
    %6 = tpu.matmul %5, %3, %cst {dimension_numbers = #tpu.dot_dimension_numbers<[1], [1], [0], [0], [0, 0, 1, 0], [], []>} : vector<8x128xf32>, vector<128x128xf32>, vector<8x128xf32> -> vector<8x128xf32>
    %7 = arith.addf %4, %6 : vector<8x128xf32>
    %c0_6 = arith.constant 0 : index
    %c0_7 = arith.constant 0 : index
    %8 = vector.load %arg6[%c0_6, %c0_7] : memref<8x128xf32, #tpu.memory_space<vmem>>, vector<8x128xf32>
    tpu.vector_store %arg6[%c0_6, %c0_7], %7 {strides = array<i32>} : memref<8x128xf32, #tpu.memory_space<vmem>>, vector<8x128xf32>,
    %c0_8 = arith.constant 0 : index
    %c0_9 = arith.constant 0 : index
    %9 = vector.load %arg7[%c0_8, %c0_9] : memref<128x1xf32, #tpu.memory_space<vmem>>, vector<128x1xf32>
    %10 = arith.mulf %3, %3 : vector<128x128xf32>
    %cst_10 = arith.constant dense<0.000000e+00> : vector<128xf32>
    %11 = vector.multi_reduction <add>, %10, %cst_10 [1] : vector<128x128xf32> to vector<128xf32>
    %12 = vector.shape_cast %11 : vector<128xf32> to vector<128x1xf32>
    %13 = arith.addf %9, %12 : vector<128x1xf32>
    %c0_11 = arith.constant 0 : index
    %c0_12 = arith.constant 0 : index
    %14 = vector.load %arg7[%c0_11, %c0_12] : memref<128x1xf32, #tpu.memory_space<vmem>>, vector<128x1xf32>
    tpu.vector_store %arg7[%c0_11, %c0_12], %13 {strides = array<i32>} : memref<128x1xf32, #tpu.memory_space<vmem>>, vector<128x1xf32>,
    %c0_i32_13 = arith.constant 0 : i32
    %15 = arith.cmpi eq, %arg2, %c0_i32_13 : i32
    %16 = arith.extui %15 : i1 to i32
    %c0_i32_14 = arith.constant 0 : i32
    %17 = arith.cmpi ne, %16, %c0_i32_14 : i32
    scf.if %17 {
      %c0_15 = arith.constant 0 : index
      %c0_16 = arith.constant 0 : index
      %18 = vector.load %arg7[%c0_15, %c0_16] : memref<128x1xf32, #tpu.memory_space<vmem>>, vector<128x1xf32>
      %19 = math.sqrt %18 : vector<128x1xf32>
      %cst_17 = arith.constant 5.65685448E-4 : f32
      %20 = vector.broadcast %cst_17 : f32 to vector<128x1xf32>
      %21 = arith.addf %20, %19 : vector<128x1xf32>
      %cst_18 = arith.constant 1.000000e+00 : f32
      %22 = vector.broadcast %cst_18 : f32 to vector<128x1xf32>
      %23 = arith.divf %22, %21 : vector<128x1xf32>
      %24 = vector.shape_cast %23 : vector<128x1xf32> to vector<1x128xf32>
      %c0_19 = arith.constant 0 : index
      %c0_20 = arith.constant 0 : index
      %25 = vector.load %arg6[%c0_19, %c0_20] : memref<8x128xf32, #tpu.memory_space<vmem>>, vector<8x128xf32>
      %26 = vector.broadcast %24 : vector<1x128xf32> to vector<8x128xf32>
      %27 = arith.mulf %25, %26 : vector<8x128xf32>
      %c0_21 = arith.constant 0 : index
      %c0_22 = arith.constant 0 : index
      %28 = vector.load %arg5[%c0_21, %c0_22] : memref<1x128xf32, #tpu.memory_space<vmem>>, vector<1x128xf32>
      %29 = vector.broadcast %28 : vector<1x128xf32> to vector<8x128xf32>
      %30 = arith.addf %27, %29 : vector<8x128xf32>
      %c0_23 = arith.constant 0 : index
      %c0_24 = arith.constant 0 : index
      %31 = vector.load %arg6[%c0_23, %c0_24] : memref<8x128xf32, #tpu.memory_space<vmem>>, vector<8x128xf32>
      tpu.vector_store %arg6[%c0_23, %c0_24], %30 {strides = array<i32>} : memref<8x128xf32, #tpu.memory_space<vmem>>, vector<8x128xf32>,
    } else {
    }
    return
  }
  func.func @transform_0(%arg0: i32, %arg1: i32, %arg2: i32) -> (i32, i32) {
    %c0_i32 = arith.constant 0 : i32
    return %arg0, %arg2 : i32, i32
  }
  func.func @transform_1(%arg0: i32, %arg1: i32, %arg2: i32) -> (i32, i32) {
    %c0_i32 = arith.constant 0 : i32
    return %arg1, %arg2 : i32, i32
  }
  func.func @transform_2(%arg0: i32, %arg1: i32, %arg2: i32) -> (i32, i32) {
    %c0_i32 = arith.constant 0 : i32
    %c0_i32_0 = arith.constant 0 : i32
    return %c0_i32, %arg1 : i32, i32
  }
  func.func @transform_3(%arg0: i32, %arg1: i32, %arg2: i32) -> (i32, i32) {
    %c0_i32 = arith.constant 0 : i32
    return %arg0, %arg1 : i32, i32
  }
}

</mosaic_0001>

<bundles_post_ra>
// kernel: tpu_custom_call.1
= control target key start
LH: loop header
LB: loop body
LE: loop exit
PB: predicated region body
PF: predicated region fallthrough
CT: control target
= control target key end

     0   :  { %8 = vsyncpa [#allocation4], 0  ;;  %s1162_s0 = inlined_call_operand.hbm [shape: f32[8,128], index: 0, kind: input, shape index: {}]   ;;  %s1163_s1 = inlined_call_operand.hbm [shape: f32[128,128], index: 1, kind: input, shape index: {}]   ;;  %s1164_s2 = inlined_call_operand.vmem [shape: f32[1,128], index: 2, kind: input, shape index: {}]   ;;  %s1165_s3 = inlined_call_operand.hbm [shape: f32[8,128], index: 3, kind: output, shape index: {}]  }
   0x1   :  { %9 = vsyncpa [#allocation7], 0 }
   0x2   :  { %10 = vsyncpa [#allocation5], 0  ;;  %s868_s12 = smov [#allocation3]   ;;  %s869_s14 = smov [#allocation6]  }
   0x3   :  { %s17_s13 = sshll.u32 %s868_s12, 4  ;;  %s26_s15 = sshll.u32 %s869_s14, 4  ;;  %s18_s13 = int_to_ptr.vmem [resolvable:$true] %s17_s13  ;;  %s897_s15 = int_to_ptr.vmem [resolvable:$true] %s26_s15 }
   0x4   :  { %s796_s18 = scalar_lea.hbm %s1162_s0, 128 }
   0x5   :  { %p797_p0 = scmp.ne.s32.totalorder %s1162_s0, %s796_s18  ;;  %p800_p1 = scmp.lt.u32.totalorder %s796_s18, %s1162_s0 }
   0x7   :  { %p802_p2 = pnand %p800_p1, %p797_p0 }
   0x9   :  { %805 = shalt.err (!%p802_p2)
}
   0xa   :  { %s806_s23 = scalar_lea.vmem %s18_s13, 128  ;;  %p811_p4 = scmp.lt.s32.totalorder %s18_s13, %s18_s13 }
   0xb   :  { %p807_p3 = scmp.ne.s32.totalorder %s18_s13, %s806_s23  ;;  %p812_p5 = scmp.lt.s32.totalorder %s806_s23, %s806_s23 }
   0xd   :  { %p813_p6 = por %p812_p5, %p811_p4 }
   0xf   :  { %p814_p7 = pnand %p813_p6, %p807_p3 }
  0x11   :  { %817 = shalt.err (!%p814_p7)
}
  0x12   :  { %20 = dma.hbm_to_vmem [thread:$0]  %s1162_s0, 128, %s18_s13, [#allocation4]  }
  0x13   :  { %s818_s28 = scalar_lea.hbm %s1163_s1, 2048 }
  0x14   :  { %p819_p8 = scmp.ne.s32.totalorder %s1163_s1, %s818_s28  ;;  %p822_p9 = scmp.lt.u32.totalorder %s818_s28, %s1163_s1 }
  0x16   :  { %p824_p10 = pnand %p822_p9, %p819_p8 }
  0x18   :  { %827 = shalt.err (!%p824_p10)
}
  0x19   :  { %s828_s6 = scalar_lea.vmem %s897_s15, 2048  ;;  %p833_p12 = scmp.lt.s32.totalorder %s897_s15, %s897_s15 }
  0x1a   :  { %p829_p11 = scmp.ne.s32.totalorder %s897_s15, %s828_s6  ;;  %p834_p13 = scmp.lt.s32.totalorder %s828_s6, %s828_s6 }
  0x1c   :  { %p835_p0 = por %p834_p13, %p833_p12 }
  0x1e   :  { %p836_p1 = pnand %p835_p0, %p829_p11 }
  0x20   :  { %839 = shalt.err (!%p836_p1)
}
  0x21   :  { %s870_s0 = smov 128   ;;  %s871_s7 = smov 8  }
  0x22   :  { %32 = dma.hbm_to_vmem [thread:$0]  %s1163_s1, 2048, %s897_s15, [#allocation7], %s870_s0, %s870_s0, %s871_s7  }
  0x23   :  { %862 = dma.done.wait [#allocation4], 128  }
  0x24   :  { %863 = vsyncadd [#allocation4], 4294967168 }
  0x25   :  { %864 = dma.done.wait [#allocation7], 2048  }
  0x26   :  { %865 = vsyncadd [#allocation7], 4294965248  ;;  %vm46_vm0 = vcmask 7168   ;;  %v872_v0 = vmov 0.0|0.0   ;;  %vm873_vm1 = vmmov 0   ;;  %v874_v1 = vmov 0.0  }
  0x27   :  { %697 = vmatprep.subr.bf16.mxu0 %v872_v0  ;;  %694 = vmatprep.mubr.msk.f32.mxu0 %vm873_vm1, %v874_v1  ;;  %49 = vst.msk [vmem:[#allocation2 + $0x10] sm:$0xff] %vm46_vm0, %v874_v1  ;;  %47 = vst.msk [vmem:[#allocation2] sm:$0xff] %vm46_vm0, %v874_v1  ;;  %v65_v2 = vld [vmem:[#allocation6 + $0x10] sm:$0xff]  ;;  %v66_v3 = vld [vmem:[#allocation6 + $0x18] sm:$0xff]  ;;  %v875_v40 = vmov 0   ;;  %s876_s11 = smov [#allocation8]  }
  0x28   :  { %48 = vst.msk [vmem:[#allocation2 + $0x8] sm:$0xff] %vm46_vm0, %v874_v1  ;;  %50 = vst.msk [vmem:[#allocation2 + $0x18] sm:$0xff] %vm46_vm0, %v874_v1  ;;  %v63_v4 = vld [vmem:[#allocation6] sm:$0xff]  ;;  %v171_v5 = vmul.f32 %v65_v2, %v65_v2  ;;  %v64_v7 = vld [vmem:[#allocation6 + $0x8] sm:$0xff]  ;;  %v172_v8 = vmul.f32 %v66_v3, %v66_v3  ;;  %v701_v21 = vpack.c.bf16 %v66_v3, %v65_v2  ;;  %730 = vset.pattern.permute.xlu0 %v875_v40  ;;  %s634_s12 = sshll.u32 %s876_s11, 4  ;;  %s635_s12 = int_to_ptr.vmem [resolvable:$true] %s634_s12 }
  0x29   :  { %51 = vst.msk [vmem:[#allocation2 + $0x20] sm:$0xff] %vm46_vm0, %v874_v1  ;;  %52 = vst.msk [vmem:[#allocation2 + $0x28] sm:$0xff] %vm46_vm0, %v874_v1  ;;  %v169_v6 = vmul.f32 %v63_v4, %v63_v4  ;;  %v170_v9 = vmul.f32 %v64_v7, %v64_v7  ;;  %v68_v10 = vld [vmem:[#allocation6 + $0x28] sm:$0xff]  ;;  %v67_v11 = vld [vmem:[#allocation6 + $0x20] sm:$0xff]  ;;  %v698_v14 = vpack.c.bf16 %v64_v7, %v63_v4  ;;  %731 = vset.pattern.permute.xlu1 %v875_v40  ;;  %s840_s13 = scalar_lea.vmem %s635_s12, 128  ;;  %p845_p3 = scmp.lt.s32.totalorder %s635_s12, %s635_s12 }
  0x2a   :  { %53 = vst.msk [vmem:[#allocation2 + $0x30] sm:$0xff] %vm46_vm0, %v874_v1  ;;  %54 = vst.msk [vmem:[#allocation2 + $0x38] sm:$0xff] %vm46_vm0, %v874_v1  ;;  %189 = vadd.xlane.f32.xlu1 %v171_v5  ;;  %v174_v12 = vmul.f32 %v68_v10, %v68_v10  ;;  %v173_v13 = vmul.f32 %v67_v11, %v67_v11  ;;  %v69_v15 = vld [vmem:[#allocation6 + $0x30] sm:$0xff]  ;;  %v70_v16 = vld [vmem:[#allocation6 + $0x38] sm:$0xff]  ;;  %v704_v30 = vpack.c.bf16 %v68_v10, %v67_v11  ;;  %p841_p2 = scmp.ne.s32.totalorder %s635_s12, %s840_s13  ;;  %p846_p4 = scmp.lt.s32.totalorder %s840_s13, %s840_s13 }
  0x2b   :  { %55 = vst.msk [vmem:[#allocation2 + $0x40] sm:$0xff] %vm46_vm0, %v874_v1  ;;  %56 = vst.msk [vmem:[#allocation2 + $0x48] sm:$0xff] %vm46_vm0, %v874_v1  ;;  %185 = vadd.xlane.f32.xlu0 %v169_v6  ;;  %699 = vmatpush3.bf16.xpose.msra.mxu0 %v698_v14  ;;  %v175_v17 = vmul.f32 %v69_v15, %v69_v15  ;;  %v176_v18 = vmul.f32 %v70_v16, %v70_v16  ;;  %v72_v19 = vld [vmem:[#allocation6 + $0x48] sm:$0xff]  ;;  %v71_v20 = vld [vmem:[#allocation6 + $0x40] sm:$0xff] }
  0x2c   :  { %57 = vst.msk [vmem:[#allocation2 + $0x50] sm:$0xff] %vm46_vm0, %v874_v1  ;;  %58 = vst.msk [vmem:[#allocation2 + $0x58] sm:$0xff] %vm46_vm0, %v874_v1  ;;  %700 = vmatprep.subr.bf16.mxu0 %v872_v0  ;;  %v178_v22 = vmul.f32 %v72_v19, %v72_v19  ;;  %v177_v23 = vmul.f32 %v71_v20, %v71_v20  ;;  %v74_v24 = vld [vmem:[#allocation6 + $0x58] sm:$0xff]  ;;  %v73_v25 = vld [vmem:[#allocation6 + $0x50] sm:$0xff]  ;;  %v707_v37 = vpack.c.bf16 %v70_v16, %v69_v15  ;;  %p847_p5 = por %p846_p4, %p845_p3 }
  0x2d   :  { %59 = vst.msk [vmem:[#allocation2 + $0x60] sm:$0xff] %vm46_vm0, %v874_v1  ;;  %60 = vst.msk [vmem:[#allocation2 + $0x68] sm:$0xff] %vm46_vm0, %v874_v1  ;;  %v180_v26 = vmul.f32 %v74_v24, %v74_v24  ;;  %v179_v27 = vmul.f32 %v73_v25, %v73_v25  ;;  %v76_v28 = vld [vmem:[#allocation6 + $0x68] sm:$0xff]  ;;  %v75_v29 = vld [vmem:[#allocation6 + $0x60] sm:$0xff]  ;;  %v710_v38 = vpack.c.bf16 %v72_v19, %v71_v20 }
  0x2e   :  { %61 = vst.msk [vmem:[#allocation2 + $0x70] sm:$0xff] %vm46_vm0, %v874_v1  ;;  %62 = vst.msk [vmem:[#allocation2 + $0x78] sm:$0xff] %vm46_vm0, %v874_v1  ;;  %191 = vadd.xlane.f32.xlu1 %v172_v8  ;;  %v182_v31 = vmul.f32 %v76_v28, %v76_v28  ;;  %v181_v32 = vmul.f32 %v75_v29, %v75_v29  ;;  %v78_v33 = vld [vmem:[#allocation6 + $0x78] sm:$0xff]  ;;  %v77_v34 = vld [vmem:[#allocation6 + $0x70] sm:$0xff]  ;;  %v713_v39 = vpack.c.bf16 %v74_v24, %v73_v25  ;;  %p848_p6 = pnand %p847_p5, %p841_p2 }
  0x2f   :  { %187 = vadd.xlane.f32.xlu0 %v170_v9  ;;  %v184_v35 = vmul.f32 %v78_v33, %v78_v33  ;;  %v183_v36 = vmul.f32 %v77_v34, %v77_v34  ;;  %v716_v41 = vpack.c.bf16 %v76_v28, %v75_v29  ;;  %v719_v42 = vpack.c.bf16 %v78_v33, %v77_v34  ;;  %v80_v43 = vld [vmem:[#allocation3] sm:$0xff]  ;;  %v155_v44 = vld [vmem:[#allocation2 + $0x10] sm:$0xff]  ;;  %v156_v50 = vld [vmem:[#allocation2 + $0x18] sm:$0xff] }
  0x30   :  { %v153_v45 = vld [vmem:[#allocation2] sm:$0xff]  ;;  %v154_v51 = vld [vmem:[#allocation2 + $0x8] sm:$0xff] }
  0x31   :  { %v158_v56 = vld [vmem:[#allocation2 + $0x28] sm:$0xff]  ;;  %v157_v57 = vld [vmem:[#allocation2 + $0x20] sm:$0xff]  ;;  %v159_v62 = vld [vmem:[#allocation2 + $0x30] sm:$0xff] }
  0x32   :  { %195 = vadd.xlane.f32.xlu1 %v174_v12  ;;  %v160_v63 = vld [vmem:[#allocation2 + $0x38] sm:$0xff]  ;;  %v162_v6 = vld [vmem:[#allocation2 + $0x48] sm:$0xff]  ;;  %v161_v7 = vld [vmem:[#allocation2 + $0x40] sm:$0xff] }
  0x33   :  { %193 = vadd.xlane.f32.xlu0 %v173_v13  ;;  %702 = vmatpush3.bf16.xpose.msra.mxu0 %v701_v21  ;;  %v164_v14 = vld [vmem:[#allocation2 + $0x58] sm:$0xff]  ;;  %v163_v15 = vld [vmem:[#allocation2 + $0x50] sm:$0xff] }
  0x34   :  { %703 = vmatprep.subr.bf16.mxu0 %v872_v0  ;;  %v166_v24 = vld [vmem:[#allocation2 + $0x68] sm:$0xff]  ;;  %v165_v25 = vld [vmem:[#allocation2 + $0x60] sm:$0xff] }
  0x35   :  { %v168_v40 = vld [vmem:[#allocation2 + $0x78] sm:$0xff] }
  0x36   :  { %199 = vadd.xlane.f32.xlu1 %v176_v18 }
  0x37   :  { %197 = vadd.xlane.f32.xlu0 %v175_v17 }
  0x3a   :  { %203 = vadd.xlane.f32.xlu1 %v178_v22 }
  0x3b   :  { %201 = vadd.xlane.f32.xlu0 %v177_v23  ;;  %705 = vmatpush3.bf16.xpose.msra.mxu0 %v704_v30 }
  0x3c   :  { %706 = vmatprep.subr.bf16.mxu0 %v872_v0 }
  0x3e   :  { %207 = vadd.xlane.f32.xlu1 %v180_v26 }
  0x3f   :  { %205 = vadd.xlane.f32.xlu0 %v179_v27 }
  0x42   :  { %211 = vadd.xlane.f32.xlu1 %v182_v31 }
  0x43   :  { %209 = vadd.xlane.f32.xlu0 %v181_v32  ;;  %708 = vmatpush3.bf16.xpose.msra.mxu0 %v707_v37 }
  0x44   :  { %709 = vmatprep.subr.bf16.mxu0 %v872_v0 }
  0x46   :  { %215 = vadd.xlane.f32.xlu1 %v184_v35 }
  0x47   :  { %213 = vadd.xlane.f32.xlu0 %v183_v36 }
  0x4b   :  { %711 = vmatpush3.bf16.xpose.msra.mxu0 %v710_v38 }
  0x4c   :  { %712 = vmatprep.subr.bf16.mxu0 %v872_v0 }
  0x53   :  { %714 = vmatpush3.bf16.xpose.msra.mxu0 %v713_v39 }
  0x54   :  { %715 = vmatprep.subr.bf16.mxu0 %v872_v0 }
  0x5b   :  { %717 = vmatpush3.bf16.xpose.msra.mxu0 %v716_v41  ;;  %v167_v41 = vld [vmem:[#allocation2 + $0x70] sm:$0xff] }
  0x5c   :  { %718 = vmatprep.subr.bf16.mxu0 %v872_v0 }
  0x63   :  { %720 = vmatpush3.bf16.xpose.msra.mxu0 %v719_v42 }
  0x6a   :  { %695 = vmatmul.mubr.f32.vlgmr.msra.gmra.mrb[0].mxu0 %v80_v43 }
  0xb7   :  { %v190_v46 = vpop.xlane.xlu1 %189 }
  0xb8   :  { %v186_v47 = vpop.xlane.xlu0 %185  ;;  %v219_v48 = vadd.f32 %v190_v46, %v155_v44 }
  0xb9   :  { %v217_v49 = vadd.f32 %v186_v47, %v153_v45 }
  0xba   :  { %236 = vst.msk [vmem:[#allocation2 + $0x10] sm:$0xff] %vm46_vm0, %v219_v48 }
  0xbb   :  { %234 = vst.msk [vmem:[#allocation2] sm:$0xff] %vm46_vm0, %v217_v49  ;;  %v192_v52 = vpop.xlane.xlu1 %191 }
  0xbc   :  { %v188_v53 = vpop.xlane.xlu0 %187  ;;  %v220_v54 = vadd.f32 %v192_v52, %v156_v50 }
  0xbd   :  { %v218_v55 = vadd.f32 %v188_v53, %v154_v51 }
  0xbe   :  { %237 = vst.msk [vmem:[#allocation2 + $0x18] sm:$0xff] %vm46_vm0, %v220_v54 }
  0xbf   :  { %235 = vst.msk [vmem:[#allocation2 + $0x8] sm:$0xff] %vm46_vm0, %v218_v55  ;;  %v196_v58 = vpop.xlane.xlu1 %195 }
  0xc0   :  { %v194_v59 = vpop.xlane.xlu0 %193  ;;  %v222_v60 = vadd.f32 %v196_v58, %v158_v56 }
  0xc1   :  { %v221_v61 = vadd.f32 %v194_v59, %v157_v57  ;;  %v956_v1 = vld [vmem:[#allocation2 + $0x10] sm:$0xff] }
  0xc2   :  { %v253_v0 = vld [vmem:[#allocation2] sm:$0xff]  ;;  %239 = vst.msk [vmem:[#allocation2 + $0x28] sm:$0xff] %vm46_vm0, %v222_v60  ;;  %vm285_vm4 = vcmp.eq.f32.partialorder %v956_v1, inf  ;;  %vm287_vm5 = vcmp.eq.f32.partialorder %v956_v1, 0.0  ;;  %v288_v38 = vand.u32 2147483648, %v956_v1 }
  0xc3   :  { %238 = vst.msk [vmem:[#allocation2 + $0x20] sm:$0xff] %vm46_vm0, %v221_v61  ;;  %732 = vrsqrt.f32 %v253_v0  ;;  %v200_v3 = vpop.xlane.xlu1 %199  ;;  %vm271_vm2 = vcmp.eq.f32.partialorder %v253_v0, inf  ;;  %vm273_vm3 = vcmp.eq.f32.partialorder %v253_v0, 0.0  ;;  %v274_v28 = vand.u32 2147483648, %v253_v0 }
  0xc4   :  { %v198_v2 = vpop.xlane.xlu0 %197  ;;  %734 = vrsqrt.f32 %v956_v1  ;;  %v224_v5 = vadd.f32 %v200_v3, %v160_v63 }
  0xc5   :  { %v223_v4 = vadd.f32 %v198_v2, %v159_v62  ;;  %v963_v9 = vld [vmem:[#allocation2 + $0x18] sm:$0xff] }
  0xc6   :  { %v961_v8 = vld [vmem:[#allocation2 + $0x8] sm:$0xff]  ;;  %241 = vst.msk [vmem:[#allocation2 + $0x38] sm:$0xff] %vm46_vm0, %v224_v5  ;;  %vm292_vm8 = vcmp.eq.f32.partialorder %v963_v9, inf  ;;  %v295_v62 = vand.u32 2147483648, %v963_v9  ;;  %vm294_vm10 = vcmp.eq.f32.partialorder %v963_v9, 0.0 }
  0xc7   :  { %240 = vst.msk [vmem:[#allocation2 + $0x30] sm:$0xff] %vm46_vm0, %v223_v4  ;;  %736 = vrsqrt.f32 %v961_v8  ;;  %v204_v10 = vpop.xlane.xlu1 %203  ;;  %vm278_vm6 = vcmp.eq.f32.partialorder %v961_v8, inf  ;;  %v281_v46 = vand.u32 2147483648, %v961_v8  ;;  %vm280_vm7 = vcmp.eq.f32.partialorder %v961_v8, 0.0 }
  0xc8   :  { %v202_v11 = vpop.xlane.xlu0 %201  ;;  %738 = vrsqrt.f32 %v963_v9  ;;  %v226_v12 = vadd.f32 %v204_v10, %v162_v6 }
  0xc9   :  { %v225_v13 = vadd.f32 %v202_v11, %v161_v7  ;;  %v971_v17 = vld [vmem:[#allocation2 + $0x28] sm:$0xff] }
  0xca   :  { %v969_v16 = vld [vmem:[#allocation2 + $0x20] sm:$0xff]  ;;  %243 = vst.msk [vmem:[#allocation2 + $0x48] sm:$0xff] %vm46_vm0, %v226_v12  ;;  %vm306_vm12 = vcmp.eq.f32.partialorder %v971_v17, inf  ;;  %vm308_vm13 = vcmp.eq.f32.partialorder %v971_v17, 0.0 }
  0xcb   :  { %242 = vst.msk [vmem:[#allocation2 + $0x40] sm:$0xff] %vm46_vm0, %v225_v13  ;;  %740 = vrsqrt.f32 %v969_v16  ;;  %v208_v18 = vpop.xlane.xlu1 %207  ;;  %vm299_vm9 = vcmp.eq.f32.partialorder %v969_v16, inf  ;;  %v302_v2 = vand.u32 2147483648, %v969_v16  ;;  %vm301_vm11 = vcmp.eq.f32.partialorder %v969_v16, 0.0 }
  0xcc   :  { %v206_v19 = vpop.xlane.xlu0 %205  ;;  %742 = vrsqrt.f32 %v971_v17  ;;  %v228_v21 = vadd.f32 %v208_v18, %v164_v14 }
  0xcd   :  { %v733_v20 = vpop.eup %732  ;;  %v227_v22 = vadd.f32 %v206_v19, %v163_v15  ;;  %v982_v30 = vld [vmem:[#allocation2 + $0x38] sm:$0xff] }
  0xce   :  { %v735_v23 = vpop.eup %734  ;;  %v270_v26 = vmul.f32 %v733_v20, %v253_v0  ;;  %v977_v27 = vld [vmem:[#allocation2 + $0x30] sm:$0xff]  ;;  %245 = vst.msk [vmem:[#allocation2 + $0x58] sm:$0xff] %vm46_vm0, %v228_v21 }
  0xcf   :  { %244 = vst.msk [vmem:[#allocation2 + $0x50] sm:$0xff] %vm46_vm0, %v227_v22  ;;  %v284_v29 = vmul.f32 %v735_v23, %v956_v1  ;;  %v212_v31 = vpop.xlane.xlu1 %211  ;;  %744 = vrsqrt.f32 %v977_v27  ;;  %vm313_vm14 = vcmp.eq.f32.partialorder %v977_v27, inf  ;;  %vm315_vm1 = vcmp.eq.f32.partialorder %v977_v27, 0.0 }
  0xd0   :  { %v210_v32 = vpop.xlane.xlu0 %209  ;;  %v272_v33 = vsel %vm271_vm2, %v253_v0, %v270_v26  ;;  %v230_v35 = vadd.f32 %v212_v31, %v166_v24  ;;  %746 = vrsqrt.f32 %v982_v30  ;;  %v316_v20 = vand.u32 2147483648, %v977_v27 }
  0xd1   :  { %v737_v34 = vpop.eup %736  ;;  %v229_v36 = vadd.f32 %v210_v32, %v165_v25  ;;  %v275_v37 = vsel %vm273_vm3, %v274_v28, %v272_v33  ;;  %v286_v44 = vsel %vm285_vm4, %v956_v1, %v284_v29  ;;  %v990_v45 = vld [vmem:[#allocation2 + $0x48] sm:$0xff]  ;;  %vm320_vm3 = vcmp.eq.f32.partialorder %v982_v30, inf }
  0xd2   :  { %v739_v39 = vpop.eup %738  ;;  %v381_v42 = vadd.f32 0.00056568545, %v275_v37  ;;  %v277_v43 = vmul.f32 %v737_v34, %v961_v8  ;;  %247 = vst.msk [vmem:[#allocation2 + $0x68] sm:$0xff] %vm46_vm0, %v230_v35  ;;  %748 = vrsqrt.f32 %v990_v45  ;;  %v289_v55 = vsel %vm287_vm5, %v288_v38, %v286_v44  ;;  %v1008_v61 = vld [vmem:[#allocation2 + $0x40] sm:$0xff] }
  0xd3   :  { %246 = vst.msk [vmem:[#allocation2 + $0x60] sm:$0xff] %vm46_vm0, %v229_v36  ;;  %v291_v47 = vmul.f32 %v739_v39, %v963_v9  ;;  %v216_v48 = vpop.xlane.xlu1 %215  ;;  %v383_v63 = vadd.f32 0.00056568545, %v289_v55  ;;  %vm334_vm15 = vcmp.eq.f32.partialorder %v990_v45, inf  ;;  %v337_v11 = vand.u32 2147483648, %v990_v45 }
  0xd4   :  { %v214_v49 = vpop.xlane.xlu0 %213  ;;  %750 = vrcp.f32 %v381_v42  ;;  %v279_v50 = vsel %vm278_vm6, %v961_v8, %v277_v43  ;;  %v232_v52 = vadd.f32 %v216_v48, %v168_v40  ;;  %vm322_vm5 = vcmp.eq.f32.partialorder %v982_v30, 0.0 }
  0xd5   :  { %v741_v51 = vpop.eup %740  ;;  %v231_v53 = vadd.f32 %v214_v49, %v167_v41  ;;  %v282_v54 = vsel %vm280_vm7, %v281_v46, %v279_v50  ;;  %v293_v58 = vsel %vm292_vm8, %v963_v9, %v291_v47  ;;  %v1006_v60 = vld [vmem:[#allocation2 + $0x58] sm:$0xff]  ;;  %v309_v9 = vand.u32 2147483648, %v971_v17 }
  0xd6   :  { %v743_v56 = vpop.eup %742  ;;  %v382_v57 = vadd.f32 0.00056568545, %v282_v54  ;;  %v298_v59 = vmul.f32 %v741_v51, %v969_v16  ;;  %249 = vst.msk [vmem:[#allocation2 + $0x78] sm:$0xff] %vm46_vm0, %v232_v52  ;;  %752 = vrsqrt.f32 %v1006_v60  ;;  %v296_v1 = vsel %vm294_vm10, %v295_v62, %v293_v58  ;;  %v1037_v19 = vld [vmem:[#allocation2 + $0x50] sm:$0xff] }
  0xd7   :  { %248 = vst.msk [vmem:[#allocation2 + $0x70] sm:$0xff] %vm46_vm0, %v231_v53  ;;  %v305_v3 = vmul.f32 %v743_v56, %v971_v17  ;;  %v384_v8 = vadd.f32 0.00056568545, %v296_v1  ;;  %vm336_vm0 = vcmp.eq.f32.partialorder %v990_v45, 0.0  ;;  %vm348_vm2 = vcmp.eq.f32.partialorder %v1006_v60, inf }
  0xd8   :  { %754 = vrcp.f32 %v382_v57  ;;  %v300_v0 = vsel %vm299_vm9, %v969_v16, %v298_v59  ;;  %v351_v23 = vand.u32 2147483648, %v1006_v60  ;;  %vm350_vm4 = vcmp.eq.f32.partialorder %v1006_v60, 0.0 }
  0xd9   :  { %756 = vrsqrt.f32 %v1008_v61  ;;  %v745_v4 = vpop.eup %744  ;;  %v1022_v5 = vld [vmem:[#allocation2 + $0x68] sm:$0xff]  ;;  %v303_v6 = vsel %vm301_vm11, %v302_v2, %v300_v0  ;;  %v307_v12 = vsel %vm306_vm12, %v971_v17, %v305_v3  ;;  %v323_v36 = vand.u32 2147483648, %v982_v30 }
  0xda   :  { %758 = vrsqrt.f32 %v1022_v5  ;;  %v747_v7 = vpop.eup %746  ;;  %v312_v13 = vmul.f32 %v745_v4, %v977_v27  ;;  %v385_v15 = vadd.f32 0.00056568545, %v303_v6  ;;  %v310_v22 = vsel %vm308_vm13, %v309_v9, %v307_v12  ;;  %v1049_v24 = vld [vmem:[#allocation2 + $0x60] sm:$0xff] }
  0xdb   :  { %760 = vrcp.f32 %v383_v63  ;;  %v319_v29 = vmul.f32 %v747_v7, %v982_v30  ;;  %v386_v35 = vadd.f32 0.00056568545, %v310_v22  ;;  %vm362_vm6 = vcmp.eq.f32.partialorder %v1022_v5, inf }
  0xdc   :  { %v749_v10 = vpop.eup %748  ;;  %v314_v28 = vsel %vm313_vm14, %v977_v27, %v312_v13  ;;  %v365_v41 = vand.u32 2147483648, %v1022_v5  ;;  %vm364_vm7 = vcmp.eq.f32.partialorder %v1022_v5, 0.0  ;;  %vm327_vm8 = vcmp.eq.f32.partialorder %v1008_v61, inf }
  0xdd   :  { %v333_v16 = vmul.f32 %v749_v10, %v990_v45  ;;  %v1035_v18 = vld [vmem:[#allocation2 + $0x78] sm:$0xff]  ;;  %v317_v38 = vsel %vm315_vm1, %v316_v20, %v314_v28  ;;  %v321_v42 = vsel %vm320_vm3, %v982_v30, %v319_v29  ;;  %vm329_vm9 = vcmp.eq.f32.partialorder %v1008_v61, 0.0 }
  0xde   :  { %v751_v14 = vpop.eup %750  ;;  %762 = vrsqrt.f32 %v1035_v18  ;;  %v1058_v33 = vld [vmem:[#allocation2 + $0x70] sm:$0xff]  ;;  %v387_v46 = vadd.f32 0.00056568545, %v317_v38  ;;  %v324_v48 = vsel %vm322_vm5, %v323_v36, %v321_v42  ;;  %vm376_vm10 = vcmp.eq.f32.partialorder %v1035_v18, inf }
  0xdf   :  { %447 = vperm.xlu0 %730, %v751_v14   ;;  %764 = vrcp.f32 %v384_v8  ;;  %v335_v21 = vsel %vm334_vm15, %v990_v45, %v333_v16  ;;  %v379_v51 = vand.u32 2147483648, %v1035_v18  ;;  %v330_v52 = vand.u32 2147483648, %v1008_v61 }
  0xe0   :  { %v753_v25 = vpop.eup %752  ;;  %v338_v26 = vsel %vm336_vm0, %v337_v11, %v335_v21  ;;  %766 = vrsqrt.f32 %v1037_v19  ;;  %vm378_vm11 = vcmp.eq.f32.partialorder %v1035_v18, 0.0  ;;  %v388_v57 = vadd.f32 0.00056568545, %v324_v48 }
  0xe1   :  { %768 = vrcp.f32 %v385_v15  ;;  %v390_v32 = vadd.f32 0.00056568545, %v338_v26  ;;  %v347_v17 = vmul.f32 %v753_v25, %v1006_v60  ;;  %vm341_vm12 = vcmp.eq.f32.partialorder %v1037_v19, inf }
  0xe2   :  { %v755_v31 = vpop.eup %754  ;;  %770 = vrsqrt.f32 %v1049_v24  ;;  %v344_v1 = vand.u32 2147483648, %v1037_v19  ;;  %vm343_vm13 = vcmp.eq.f32.partialorder %v1037_v19, 0.0  ;;  %vm355_vm14 = vcmp.eq.f32.partialorder %v1049_v24, inf }
  0xe3   :  { %v757_v34 = vpop.eup %756  ;;  %450 = vperm.xlu1 %731, %v755_v31   ;;  %772 = vrcp.f32 %v390_v32  ;;  %v349_v37 = vsel %vm348_vm2, %v1006_v60, %v347_v17  ;;  %v358_v9 = vand.u32 2147483648, %v1049_v24  ;;  %vm357_vm15 = vcmp.eq.f32.partialorder %v1049_v24, 0.0 }
  0xe4   :  { %v759_v39 = vpop.eup %758  ;;  %v352_v40 = vsel %vm350_vm4, %v351_v23, %v349_v37  ;;  %774 = vrsqrt.f32 %v1058_v33  ;;  %v326_v27 = vmul.f32 %v757_v34, %v1008_v61  ;;  %vm369_vm0 = vcmp.eq.f32.partialorder %v1058_v33, inf }
  0xe5   :  { %v761_v43 = vpop.eup %760  ;;  %v392_v44 = vadd.f32 0.00056568545, %v352_v40  ;;  %v361_v45 = vmul.f32 %v759_v39, %v1022_v5  ;;  %776 = vrcp.f32 %v386_v35  ;;  %v372_v16 = vand.u32 2147483648, %v1058_v33 }
  0xe6   :  { %v328_v56 = vsel %vm327_vm8, %v1008_v61, %v326_v27  ;;  %vm371_vm1 = vcmp.eq.f32.partialorder %v1058_v33, 0.0  ;;  %v494_v34 = vlaneseq  ;;  %vm505_vm2 = vcmask 130112  }
  0xe7   :  { %453 = vperm.xlu1 %731, %v761_v43   ;;  %778 = vrcp.f32 %v392_v44  ;;  %v363_v47 = vsel %vm362_vm6, %v1022_v5, %v361_v45  ;;  %v331_v0 = vsel %vm329_vm9, %v330_v52, %v328_v56  ;;  %vm512_vm3 = vcmask 195712  }
  0xe8   :  { %v763_v49 = vpop.eup %762  ;;  %v366_v50 = vsel %vm364_vm7, %v365_v41, %v363_v47  ;;  %780 = vrcp.f32 %v387_v46  ;;  %v389_v7 = vadd.f32 0.00056568545, %v331_v0  ;;  %v1110_v36 = vand.u32 127, %v494_v34 }
  0xe9   :  { %v765_v53 = vpop.eup %764  ;;  %v394_v54 = vadd.f32 0.00056568545, %v366_v50  ;;  %v375_v55 = vmul.f32 %v763_v49, %v1035_v18  ;;  %v1114_v40 = vshrl.u32 %v494_v34, 7  ;;  %vm519_vm4 = vcmask 261312  }
  0xea   :  { %v767_v30 = vpop.eup %766  ;;  %v500_v37 = vadd.s32 4294967288, %v1110_v36  ;;  %v507_v39 = vadd.s32 4294967280, %v1110_v36  ;;  %v514_v41 = vadd.s32 4294967272, %v1110_v36  ;;  %v521_v42 = vadd.s32 4294967264, %v1110_v36 }
  0xeb   :  { %456 = vperm.xlu1 %731, %v765_v53   ;;  %v769_v58 = vpop.eup %768  ;;  %782 = vrcp.f32 %v394_v54  ;;  %v377_v59 = vsel %vm376_vm10, %v1035_v18, %v375_v55  ;;  %v340_v60 = vmul.f32 %v767_v30, %v1037_v19  ;;  %v528_v44 = vadd.s32 4294967256, %v1110_v36 }
  0xec   :  { %v771_v62 = vpop.eup %770  ;;  %v380_v63 = vsel %vm378_vm11, %v379_v51, %v377_v59  ;;  %784 = vrcp.f32 %v388_v57  ;;  %v503_v43 = vsub.s32 %v500_v37, %v1114_v40  ;;  %v510_v46 = vsub.s32 %v507_v39, %v1114_v40 }
  0xed   :  { %v773_v2 = vpop.eup %772  ;;  %v396_v3 = vadd.f32 0.00056568545, %v380_v63  ;;  %v342_v4 = vsel %vm341_vm12, %v1037_v19, %v340_v60  ;;  %v354_v5 = vmul.f32 %v771_v62, %v1049_v24  ;;  %v535_v47 = vadd.s32 4294967248, %v1110_v36 }
  0xee   :  { %v775_v6 = vpop.eup %774  ;;  %474 = vperm.xlu0 %730, %v773_v2   ;;  %v345_v8 = vsel %vm343_vm13, %v344_v1, %v342_v4  ;;  %v498_v48 = vsub.s32 %v1110_v36, %v1114_v40  ;;  %v517_v49 = vsub.s32 %v514_v41, %v1114_v40  ;;  %v542_v50 = vadd.s32 4294967240, %v1110_v36 }
  0xef   :  { %459 = vperm.xlu1 %731, %v769_v58   ;;  %786 = vrcp.f32 %v396_v3  ;;  %v777_v61 = vpop.eup %776  ;;  %v356_v11 = vsel %vm355_vm14, %v1049_v24, %v354_v5  ;;  %v368_v12 = vmul.f32 %v775_v6, %v1058_v33  ;;  %v391_v13 = vadd.f32 0.00056568545, %v345_v8 }
  0xf0   :  { %788 = vrcp.f32 %v389_v7  ;;  %v359_v15 = vsel %vm357_vm15, %v358_v9, %v356_v11  ;;  %v524_v51 = vsub.s32 %v521_v42, %v1114_v40  ;;  %v531_v53 = vsub.s32 %v528_v44, %v1114_v40 }
  0xf1   :  { %v779_v10 = vpop.eup %778  ;;  %v370_v19 = vsel %vm369_vm0, %v1058_v33, %v368_v12  ;;  %790 = vrcp.f32 %v391_v13  ;;  %v393_v20 = vadd.f32 0.00056568545, %v359_v15  ;;  %v538_v30 = vsub.s32 %v535_v47, %v1114_v40 }
  0xf2   :  { %480 = vperm.xlu0 %730, %v779_v10   ;;  %v781_v14 = vpop.eup %780  ;;  %v373_v22 = vsel %vm371_vm1, %v372_v16, %v370_v19  ;;  %v549_v57 = vadd.s32 4294967232, %v1110_v36  ;;  %v545_v60 = vsub.s32 %v542_v50, %v1114_v40  ;;  %vm526_vm5 = vcmask 326912   ;;  %v644_v50 = vld [vmem:[%s1164_s2] ss:$0 sm:$0xff] }
  0xf3   :  { %462 = vperm.xlu1 %731, %v777_v61   ;;  %792 = vrcp.f32 %v393_v20  ;;  %v395_v24 = vadd.f32 0.00056568545, %v373_v22  ;;  %v556_v0 = vadd.s32 4294967224, %v1110_v36  ;;  %vm533_vm6 = vcmask 392512  }
  0xf4   :  { %v552_v5 = vsub.s32 %v549_v57, %v1114_v40  ;;  %v563_v6 = vadd.s32 4294967216, %v1110_v36  ;;  %vm540_vm7 = vcmask 458112   ;;  %vm547_vm8 = vcmask 523712  }
  0xf5   :  { %v783_v18 = vpop.eup %782  ;;  %794 = vrcp.f32 %v395_v24  ;;  %v559_v10 = vsub.s32 %v556_v0, %v1114_v40  ;;  %v570_v12 = vadd.s32 4294967208, %v1110_v36  ;;  %vm554_vm9 = vcmask 589312  }
  0xf6   :  { %486 = vperm.xlu0 %730, %v783_v18   ;;  %v785_v21 = vpop.eup %784  ;;  %v566_v16 = vsub.s32 %v563_v6, %v1114_v40  ;;  %v577_v18 = vadd.s32 4294967200, %v1110_v36  ;;  %vm561_vm10 = vcmask 654912   ;;  %vm568_vm11 = vcmask 720512  }
  0xf7   :  { %465 = vperm.xlu1 %731, %v781_v14   ;;  %v573_v22 = vsub.s32 %v570_v12, %v1114_v40  ;;  %vm575_vm12 = vcmask 786112   ;;  %vm582_vm13 = vcmask 851712   ;;  %vm589_vm14 = vcmask 917312  }
  0xf8   :  { %vm596_vm15 = vcmask 982912   ;;  %vm603_vm0 = vcmask 1048512  }
  0xf9   :  { %v787_v23 = vpop.eup %786 }
  0xfa   :  { %492 = vperm.xlu0 %730, %v787_v23   ;;  %v789_v25 = vpop.eup %788  ;;  %v584_v23 = vadd.s32 4294967192, %v1110_v36 }
  0xfb   :  { %468 = vperm.xlu1 %731, %v785_v21   ;;  %v791_v26 = vpop.eup %790 }
  0xfd   :  { %v793_v28 = vpop.eup %792 }
  0xff   :  { %471 = vperm.xlu1 %731, %v789_v25   ;;  %v795_v29 = vpop.eup %794 }
 0x103   :  { %477 = vperm.xlu1 %731, %v791_v26  }
 0x107   :  { %483 = vperm.xlu1 %731, %v793_v28   ;;  %v580_v28 = vsub.s32 %v577_v18, %v1114_v40 }
 0x10b   :  { %489 = vperm.xlu1 %731, %v795_v29   ;;  %v591_v29 = vadd.s32 4294967184, %v1110_v36 }
 0x10d   :  { %v594_v39 = vsub.s32 %v591_v29, %v1114_v40 }
 0x13d   :  { %v1108_v31 = vpop.f32.mrb[0].mxu0 }
 0x13e   :  { %v696_v32 = vpop.f32.mrb[1].mxu0 }
 0x13f   :  { %v598_v32 = vadd.s32 4294967176, %v1110_v36 }
 0x141   :  { %v601_v41 = vsub.s32 %v598_v32, %v1114_v40 }
 0x15e   :  { %v448_v27 = vpop.permute.xlu0 %447 }
 0x15f   :  { %v499_v58 = vrot.slane %v448_v27, %v498_v48 }
 0x162   :  { %v451_v17 = vpop.permute.xlu1 %450 }
 0x163   :  { %v504_v52 = vrot.slane %v451_v17, %v503_v43 }
 0x165   :  { %v506_v63 = vsel %vm505_vm2, %v504_v52, %v499_v58 }
 0x166   :  { %v454_v33 = vpop.permute.xlu1 %453 }
 0x167   :  { %v511_v55 = vrot.slane %v454_v33, %v510_v46 }
 0x169   :  { %v513_v3 = vsel %vm512_vm3, %v511_v55, %v506_v63 }
 0x16a   :  { %v457_v35 = vpop.permute.xlu1 %456 }
 0x16b   :  { %v518_v59 = vrot.slane %v457_v35, %v517_v49  ;;  %v587_v35 = vsub.s32 %v584_v23, %v1114_v40 }
 0x16d   :  { %v475_v56 = vpop.permute.xlu0 %474  ;;  %v520_v7 = vsel %vm519_vm4, %v518_v59, %v513_v3 }
 0x16e   :  { %v460_v38 = vpop.permute.xlu1 %459  ;;  %v560_v21 = vrot.slane %v475_v56, %v559_v10 }
 0x16f   :  { %v525_v62 = vrot.slane %v460_v38, %v524_v51 }
 0x171   :  { %v527_v8 = vsel %vm526_vm5, %v525_v62, %v520_v7  ;;  %v481_v9 = vpop.permute.xlu0 %480 }
 0x172   :  { %v463_v45 = vpop.permute.xlu1 %462  ;;  %v574_v34 = vrot.slane %v481_v9, %v573_v22 }
 0x173   :  { %v532_v1 = vrot.slane %v463_v45, %v531_v53 }
 0x175   :  { %v534_v11 = vsel %vm533_vm6, %v532_v1, %v527_v8  ;;  %v487_v25 = vpop.permute.xlu0 %486 }
 0x176   :  { %v466_v54 = vpop.permute.xlu1 %465  ;;  %v588_v45 = vrot.slane %v487_v25, %v587_v35 }
 0x177   :  { %v539_v4 = vrot.slane %v466_v54, %v538_v30 }
 0x179   :  { %v541_v14 = vsel %vm540_vm7, %v539_v4, %v534_v11  ;;  %v493_v43 = vpop.permute.xlu0 %492 }
 0x17a   :  { %v469_v2 = vpop.permute.xlu1 %468  ;;  %v602_v46 = vrot.slane %v493_v43, %v601_v41 }
 0x17b   :  { %v546_v61 = vrot.slane %v469_v2, %v545_v60 }
 0x17d   :  { %v548_v19 = vsel %vm547_vm8, %v546_v61, %v541_v14 }
 0x17e   :  { %v472_v13 = vpop.permute.xlu1 %471 }
 0x17f   :  { %v553_v15 = vrot.slane %v472_v13, %v552_v5 }
 0x181   :  { %v555_v20 = vsel %vm554_vm9, %v553_v15, %v548_v19 }
 0x182   :  { %v478_v24 = vpop.permute.xlu1 %477  ;;  %v562_v17 = vsel %vm561_vm10, %v560_v21, %v555_v20 }
 0x183   :  { %v567_v26 = vrot.slane %v478_v24, %v566_v16 }
 0x185   :  { %v569_v33 = vsel %vm568_vm11, %v567_v26, %v562_v17 }
 0x186   :  { %v484_v37 = vpop.permute.xlu1 %483  ;;  %v576_v42 = vsel %vm575_vm12, %v574_v34, %v569_v33 }
 0x187   :  { %v581_v38 = vrot.slane %v484_v37, %v580_v28 }
 0x189   :  { %v583_v44 = vsel %vm582_vm13, %v581_v38, %v576_v42 }
 0x18a   :  { %v490_v36 = vpop.permute.xlu1 %489  ;;  %v590_v47 = vsel %vm589_vm14, %v588_v45, %v583_v44 }
 0x18b   :  { %v595_v27 = vrot.slane %v490_v36, %v594_v39 }
 0x18d   :  { %v597_v48 = vsel %vm596_vm15, %v595_v27, %v590_v47 }
 0x18e   :  { %v604_v49 = vsel %vm603_vm0, %v602_v46, %v597_v48 }
 0x18f   :  { %v618_v40 = vmul.f32 %v604_v49, %v1108_v31 }
 0x191   :  { %v626_v51 = vadd.f32 %v644_v50, %v618_v40 }
 0x193   :  { %627 = vst [vmem:[#allocation8] sm:$0xff] %v626_v51 }
 0x194   :  { %851 = shalt.err (!%p848_p6)
}
 0x195   :  { %s852_s16 = scalar_lea.hbm %s1165_s3, 128 }
 0x196   :  { %p853_p7 = scmp.ne.s32.totalorder %s1165_s3, %s852_s16  ;;  %p856_p8 = scmp.lt.u32.totalorder %s852_s16, %s1165_s3 }
 0x198   :  { %p858_p9 = pnand %p856_p8, %p853_p7 }
 0x19a   :  { %861 = shalt.err (!%p858_p9)
}
 0x19b   :  { %637 = dma.vmem_to_hbm [thread:$0]  %s635_s12, 128, %s1165_s3, [#allocation5]  }
 0x19c   :  { %866 = dma.done.wait [#allocation5], 128  }
 0x19d   :  { %867 = vsyncadd [#allocation5], 4294967168 }
 0x19e   :  { %641 = vsyncpa [#allocation4], 1 }
 0x19f   :  { %642 = vsyncpa [#allocation7], 1 }
 0x1a0   :  { %643 = vsyncpa [#allocation5], 1 }

</bundles_post_ra>
